<compile_context>
chip_gen: v6e
topology: v6e:2x2x1
jax: 0.10.0
libtpu: 0.0.40
codegen_flags: <defaults>
</compile_context>

<pallas_src>
import functools
import math

import jax
import jax.numpy as jnp
from jax.experimental import pallas as pl
from jax.experimental.pallas import tpu as pltpu


def _caml_kernel(cols_ref, cw_ref, cb_ref, ut_ref, ot_ref, ob_ref, y_ref,
                 h_ref, *, L, TB, TO, exp_dtype):
    # cols_ref : (TB, L, KEpad)  bf16  im2col'd, zero-padded embedded inputs
    # cw_ref   : (KEpad, Hpad)   bf16  unfolded conv weight (zero-padded)
    # cb_ref   : (1, Hpad)       f32   conv bias (zero-padded)
    # ut_ref   : (Hpad, TO)      bf16  attention weight tile (u.weight.T)
    # ot_ref   : (Hpad, TO)      bf16  output weight tile (out_layer.weight.T)
    # ob_ref   : (1, TO)         f32   output bias tile
    # y_ref    : (TB, TO)        f32   logits tile
    # h_ref    : (TB*L, Hpad)    bf16  scratch: conv+tanh activations, computed
    #                                  once per batch block and reused across
    #                                  all label tiles.
    o_idx = pl.program_id(1)
    KEpad = cols_ref.shape[2]

    # --- Conv1d ("same") + tanh as one MXU matmul, only on the first O tile.
    @pl.when(o_idx == 0)
    def _():
        cols = cols_ref[...].reshape(TB * L, KEpad)                  # bf16
        h = jnp.dot(cols, cw_ref[...], preferred_element_type=jnp.float32)
        h = jnp.tanh(h + cb_ref[...])                                # (TB*L,Hpad)
        h_ref[...] = h.astype(h_ref.dtype)

    h = h_ref[...]                                                   # bf16

    # --- Attention logits for this label tile; softmax weights (s dies here).
    s = jnp.dot(h, ut_ref[...], preferred_element_type=jnp.float32)
    s = s.reshape(TB, L, TO)
    sm = s - jnp.max(s, axis=1, keepdims=True)
    e = jnp.exp(sm.astype(exp_dtype)).astype(jnp.float32)            # (TB,L,TO)

    # --- Output projection for this label tile.
    zo = jnp.dot(h, ot_ref[...], preferred_element_type=jnp.float32)
    zo = zo.reshape(TB, L, TO)

    # --- Softmax-weighted reduction over L fused with the bias add:
    #     y[b,o] = sum_l e[b,l,o]*zo[b,l,o] / sum_l e[b,l,o] + bias[o]
    num = jnp.sum(e * zo, axis=1)                                    # (TB, TO)
    den = jnp.sum(e, axis=1)                                         # (TB, TO)
    y_ref[...] = num * pl.reciprocal(den, approx=True) + ob_ref[...]


def caml_forward(x_ids, emb_table, conv_w, conv_b, u_w, out_w, out_b,
                 *, kernel_size, block_batch=None, label_tile=512,
                 use_bf16_exp=None):
    """x_ids: (B, L) int32 token ids. Returns logits (B, O) float32.

    conv_w is stored as (K, E, H) (PyTorch Conv1d weight (H, E, K) transposed).
    """
    B, L = x_ids.shape
    K = kernel_size
    if K % 2 != 1:
        # PyTorch Conv1d with padding=K//2 yields L+1 outputs for even K.
        raise NotImplementedError("even kernel_size not supported")
    pad = K // 2
    E = emb_table.shape[1]
    H = conv_w.shape[2]
    O = u_w.shape[0]

    # Lane-dense padded sizes.
    Hpad = pl.cdiv(H, 128) * 128
    KE = K * E
    KEpad = pl.cdiv(KE, 128) * 128
    Opad = pl.cdiv(O, 128) * 128
    TO = pl.cdiv(min(label_tile, Opad), 128) * 128   # label tile (lane-dense)
    Opad = pl.cdiv(Opad, TO) * TO                    # make TO divide Opad
    num_o = Opad // TO

    # Batch block: aim for ~256 MXU rows per step, but never pad a tiny batch
    # up (single-TensorCore chips gain nothing from extra grid steps).
    TB = block_batch if block_batch is not None else min(B, max(1, 256 // L))
    num_b = pl.cdiv(B, TB)
    if num_b > 1 and TB % 8 != 0:                    # sublane-aligned y blocks
        TB = pl.cdiv(TB, 8) * 8
        num_b = pl.cdiv(B, TB)
    B_pad = num_b * TB

    # bf16 exp uses the EUP at ~2x on v6e/v7x; v5e has no bf16 EUP.
    if use_bf16_exp is None:
        try:
            kind = jax.devices()[0].device_kind.lower()
        except Exception:
            kind = ""
        use_bf16_exp = ("v6" in kind) or ("v7" in kind)
    exp_dtype = jnp.bfloat16 if use_bf16_exp else jnp.float32

    # --- Glue in plain JAX: embedding gather (dropout = identity in eval),
    #     "same" padding and im2col -> lane-padded (B_pad, L, KEpad) bf16. ---
    # TODO(synk): fuse the gather into the kernel with scalar-prefetched ids.
    xe = emb_table[x_ids].astype(jnp.bfloat16)                   # (B, L, E)
    xp = jnp.pad(xe, ((0, B_pad - B), (pad, pad), (0, 0)))       # (B_pad,Lp,E)
    cols = jnp.concatenate([xp[:, k:k + L, :] for k in range(K)], axis=-1)
    cols = jnp.pad(cols, ((0, 0), (0, 0), (0, KEpad - KE)))      # (B_pad,L,KEpad)

    # Weights: unfolded conv weight, pre-transposed u / out weights, all
    # zero-padded to lane multiples (padded h columns come out exactly 0).
    cw = jnp.zeros((KEpad, Hpad), jnp.float32)
    cw = cw.at[:KE, :H].set(conv_w.reshape(KE, H)).astype(jnp.bfloat16)
    cb = jnp.zeros((1, Hpad), jnp.float32).at[0, :H].set(conv_b)
    u_t = jnp.zeros((Hpad, Opad), jnp.float32).at[:H, :O].set(u_w.T)
    u_t = u_t.astype(jnp.bfloat16)
    o_t = jnp.zeros((Hpad, Opad), jnp.float32).at[:H, :O].set(out_w.T)
    o_t = o_t.astype(jnp.bfloat16)
    ob = jnp.zeros((1, Opad), jnp.float32).at[0, :O].set(out_b)

    # Per-step VMEM budget: double-buffered inputs/outputs + h scratch +
    # f32 intermediates (s, e, zo).  Floor 32 MiB, stay under v7x's 64 MiB.
    est = (2 * TB * L * KEpad * 2
           + 2 * KEpad * Hpad * 2 + 2 * Hpad * 4
           + 2 * 2 * Hpad * TO * 2
           + 2 * TO * 4 + 2 * TB * TO * 4
           + TB * L * Hpad * 2
           + 3 * TB * L * TO * 4)
    vmem_limit = min(56 * 1024 * 1024, max(32 * 1024 * 1024, int(est * 1.5)))

    kernel = functools.partial(_caml_kernel, L=L, TB=TB, TO=TO,
                               exp_dtype=exp_dtype)

    y = pl.pallas_call(
        kernel,
        out_shape=jax.ShapeDtypeStruct((B_pad, Opad), jnp.float32),
        grid_spec=pltpu.PrefetchScalarGridSpec(
            num_scalar_prefetch=0,
            grid=(num_b, num_o),
            in_specs=[
                pl.BlockSpec((TB, L, KEpad), lambda b, o: (b, 0, 0)),
                pl.BlockSpec((KEpad, Hpad), lambda b, o: (0, 0)),
                pl.BlockSpec((1, Hpad), lambda b, o: (0, 0)),
                pl.BlockSpec((Hpad, TO), lambda b, o: (0, o)),
                pl.BlockSpec((Hpad, TO), lambda b, o: (0, o)),
                pl.BlockSpec((1, TO), lambda b, o: (0, o)),
            ],
            out_specs=pl.BlockSpec((TB, TO), lambda b, o: (b, o)),
            scratch_shapes=[pltpu.VMEM((TB * L, Hpad), jnp.bfloat16)],
        ),
        compiler_params=pltpu.CompilerParams(
            dimension_semantics=("parallel", "arbitrary"),
            vmem_limit_bytes=vmem_limit),
    )(cols, cw, cb, u_t, o_t, ob)
    return y[:B, :O]


def caml_reference(x_ids, emb_table, conv_w, conv_b, u_w, out_w, out_b,
                   *, kernel_size):
    """Pure-JAX f32 reference mirroring the PyTorch forward."""
    K = kernel_size
    pad = K // 2
    B, L = x_ids.shape
    xe = emb_table[x_ids]                                     # (B, L, E)
    xp = jnp.pad(xe, ((0, 0), (pad, pad), (0, 0)))
    h = sum(jnp.einsum('ble,eh->blh', xp[:, k:k + L, :], conv_w[k])
            for k in range(K)) + conv_b[None, None, :]
    h = jnp.tanh(h)                                           # (B, L, H)
    s = jnp.einsum('oh,blh->bol', u_w, h)                     # (B, O, L)
    alpha = jax.nn.softmax(s, axis=2)
    m = jnp.einsum('bol,blh->boh', alpha, h)                  # (B, O, H)
    return jnp.sum(out_w[None] * m, axis=2) + out_b[None]     # (B, O)


def caml_reference_matched(x_ids, emb_table, conv_w, conv_b, u_w, out_w, out_b,
                           *, kernel_size, exp_dtype=jnp.float32):
    """Pure-JAX reference applying the same bf16 casts / fusion as the kernel."""
    K = kernel_size
    pad = K // 2
    B, L = x_ids.shape
    E = emb_table.shape[1]
    xe = emb_table[x_ids].astype(jnp.bfloat16)
    xp = jnp.pad(xe, ((0, 0), (pad, pad), (0, 0)))
    cols = jnp.concatenate([xp[:, k:k + L, :] for k in range(K)], axis=-1)
    cw = conv_w.reshape(K * E, -1).astype(jnp.bfloat16)
    h = jnp.einsum('blc,ch->blh', cols, cw, preferred_element_type=jnp.float32)
    h = jnp.tanh(h + conv_b[None, None, :]).astype(jnp.bfloat16)
    s = jnp.einsum('blh,ho->blo', h, u_w.T.astype(jnp.bfloat16),
                   preferred_element_type=jnp.float32)
    zo = jnp.einsum('blh,ho->blo', h, out_w.T.astype(jnp.bfloat16),
                    preferred_element_type=jnp.float32)
    e = jnp.exp((s - jnp.max(s, axis=1, keepdims=True)).astype(exp_dtype))
    e = e.astype(jnp.float32)
    return (e * zo).sum(axis=1) / e.sum(axis=1) + out_b[None, :]


if __name__ == "__main__":
    # Small synthetic configuration consistent with the module.
    num_words = 30
    sentence_len = 16     # L
    output_dim = 8        # O
    embedding_dim = 32    # E
    hidden_channels = 16  # H
    kernel_size = 3       # K
    batch = 2

    key = jax.random.PRNGKey(0)
    k_emb, k_cw, k_cb, k_u, k_ow, k_ob, k_x = jax.random.split(key, 7)

    vocab = num_words + 2
    emb_table = jax.random.normal(k_emb, (vocab, embedding_dim), jnp.float32)
    emb_table = emb_table.at[0].set(0.0)  # padding_idx=0

    # Conv1d weight: PyTorch layout (H, E, K), xavier_uniform; stored as (K, E, H).
    fan_in, fan_out = embedding_dim * kernel_size, hidden_channels * kernel_size
    bound = math.sqrt(6.0 / (fan_in + fan_out))
    conv_w = jax.random.uniform(
        k_cw, (kernel_size, embedding_dim, hidden_channels), jnp.float32,
        -bound, bound)
    conv_b = jax.random.uniform(
        k_cb, (hidden_channels,), jnp.float32,
        -1.0 / math.sqrt(embedding_dim * kernel_size),
        1.0 / math.sqrt(embedding_dim * kernel_size))

    # u: Linear(H, O) weight (O, H), xavier_uniform.
    bound_u = math.sqrt(6.0 / (hidden_channels + output_dim))
    u_w = jax.random.uniform(k_u, (output_dim, hidden_channels), jnp.float32,
                             -bound_u, bound_u)
    # out_layer: Linear(H, O) weight (O, H) + bias (O,).
    out_w = jax.random.uniform(k_ow, (output_dim, hidden_channels), jnp.float32,
                               -bound_u, bound_u)
    out_b = jax.random.uniform(k_ob, (output_dim,), jnp.float32,
                               -1.0 / math.sqrt(hidden_channels),
                               1.0 / math.sqrt(hidden_channels))

    x_ids = jax.random.randint(k_x, (batch, sentence_len), 0, vocab,
                               dtype=jnp.int32)

    # Same exp-dtype selection as the kernel so the matched check stays tight.
    try:
        _kind = jax.devices()[0].device_kind.lower()
    except Exception:
        _kind = ""
    use_bf16_exp = ("v6" in _kind) or ("v7" in _kind)
    exp_dtype = jnp.bfloat16 if use_bf16_exp else jnp.float32

    y = caml_forward(x_ids, emb_table, conv_w, conv_b, u_w, out_w, out_b,
                     kernel_size=kernel_size, use_bf16_exp=use_bf16_exp)
    y = jax.block_until_ready(y)
    assert y.shape == (batch, output_dim)

    # Tight check against a reference with the same bf16 rounding / fusion.
    y_matched = caml_reference_matched(
        x_ids, emb_table, conv_w, conv_b, u_w, out_w, out_b,
        kernel_size=kernel_size, exp_dtype=exp_dtype)
    assert jnp.allclose(y, y_matched, atol=2e-2, rtol=2e-2), (
        float(jnp.max(jnp.abs(y - y_matched))))

    # Looser check against the full-f32 PyTorch-mirror reference.
    y_f32 = caml_reference(x_ids, emb_table, conv_w, conv_b, u_w, out_w, out_b,
                           kernel_size=kernel_size)
    assert jnp.allclose(y, y_f32, atol=5e-2, rtol=5e-2), (
        float(jnp.max(jnp.abs(y - y_f32))))

    print("KERNEL_OK")
</pallas_src>

<mosaic_0001>
module attributes {stable_mosaic.version = 11 : i64} {
  func.func @_caml_kernel(%arg0: i32, %arg1: i32, %arg2: memref<2x16x128xbf16, #tpu.memory_space<vmem>>, %arg3: memref<128x128xbf16, #tpu.memory_space<vmem>>, %arg4: memref<1x128xf32, #tpu.memory_space<vmem>>, %arg5: memref<128x128xbf16, #tpu.memory_space<vmem>>, %arg6: memref<128x128xbf16, #tpu.memory_space<vmem>>, %arg7: memref<1x128xf32, #tpu.memory_space<vmem>>, %arg8: memref<2x128xf32, #tpu.memory_space<vmem>>, %arg9: memref<32x128xbf16, #tpu.memory_space<vmem>>) attributes {dimension_semantics = [#tpu.dimension_semantics<parallel>, #tpu.dimension_semantics<arbitrary>], iteration_bounds = array<i64: 1, 1>, scalar_prefetch = 0 : i64, scratch_operands = 1 : i64, tpu.core_type = #tpu.core_type<tc>, window_params = [{transform_indices = @transform_0, window_bounds = array<i64: 2, 16, 128>}, {pipeline_mode = #tpu.pipeline_mode<synchronous>, transform_indices = @transform_1, window_bounds = array<i64: 128, 128>}, {pipeline_mode = #tpu.pipeline_mode<synchronous>, transform_indices = @transform_2, window_bounds = array<i64: 1, 128>}, {transform_indices = @transform_3, window_bounds = array<i64: 128, 128>}, {transform_indices = @transform_4, window_bounds = array<i64: 128, 128>}, {transform_indices = @transform_5, window_bounds = array<i64: 1, 128>}, {transform_indices = @transform_6, window_bounds = array<i64: 2, 128>}]} {
    %c0_i32 = arith.constant 0 : i32
    %0 = arith.cmpi eq, %arg1, %c0_i32 : i32
    %1 = arith.extui %0 : i1 to i32
    %c0_i32_0 = arith.constant 0 : i32
    %2 = arith.cmpi ne, %1, %c0_i32_0 : i32
    scf.if %2 {
      %c0_14 = arith.constant 0 : index
      %c0_15 = arith.constant 0 : index
      %c0_16 = arith.constant 0 : index
      %24 = vector.load %arg2[%c0_14, %c0_15, %c0_16] : memref<2x16x128xbf16, #tpu.memory_space<vmem>>, vector<2x16x128xbf16>
      %25 = vector.shape_cast %24 : vector<2x16x128xbf16> to vector<32x128xbf16>
      %c0_17 = arith.constant 0 : index
      %c0_18 = arith.constant 0 : index
      %26 = vector.load %arg3[%c0_17, %c0_18] : memref<128x128xbf16, #tpu.memory_space<vmem>>, vector<128x128xbf16>
      %cst_19 = arith.constant dense<0.000000e+00> : vector<32x128xf32>
      %27 = tpu.matmul %25, %26, %cst_19 {dimension_numbers = #tpu.dot_dimension_numbers<[1], [0], [0], [1], [0, 0, 1, 1], [], []>} : vector<32x128xbf16>, vector<128x128xbf16>, vector<32x128xf32> -> vector<32x128xf32>
      %c0_20 = arith.constant 0 : index
      %c0_21 = arith.constant 0 : index
      %28 = vector.load %arg4[%c0_20, %c0_21] : memref<1x128xf32, #tpu.memory_space<vmem>>, vector<1x128xf32>
      %29 = vector.broadcast %28 : vector<1x128xf32> to vector<32x128xf32>
      %30 = arith.addf %27, %29 : vector<32x128xf32>
      %31 = math.tanh %30 : vector<32x128xf32>
      %32 = arith.truncf %31 : vector<32x128xf32> to vector<32x128xbf16>
      %c0_22 = arith.constant 0 : index
      %c0_23 = arith.constant 0 : index
      %33 = vector.load %arg9[%c0_22, %c0_23] : memref<32x128xbf16, #tpu.memory_space<vmem>>, vector<32x128xbf16>
      tpu.vector_store %arg9[%c0_22, %c0_23], %32 {strides = array<i32>} : memref<32x128xbf16, #tpu.memory_space<vmem>>, vector<32x128xbf16>,
    } else {
    }
    %c0 = arith.constant 0 : index
    %c0_1 = arith.constant 0 : index
    %3 = vector.load %arg9[%c0, %c0_1] : memref<32x128xbf16, #tpu.memory_space<vmem>>, vector<32x128xbf16>
    %c0_2 = arith.constant 0 : index
    %c0_3 = arith.constant 0 : index
    %4 = vector.load %arg5[%c0_2, %c0_3] : memref<128x128xbf16, #tpu.memory_space<vmem>>, vector<128x128xbf16>
    %cst = arith.constant dense<0.000000e+00> : vector<32x128xf32>
    %5 = tpu.matmul %3, %4, %cst {dimension_numbers = #tpu.dot_dimension_numbers<[1], [0], [0], [1], [0, 0, 1, 1], [], []>} : vector<32x128xbf16>, vector<128x128xbf16>, vector<32x128xf32> -> vector<32x128xf32>
    %6 = vector.shape_cast %5 : vector<32x128xf32> to vector<2x16x128xf32>
    %cst_4 = arith.constant dense<0xFF800000> : vector<2x128xf32>
    %7 = vector.multi_reduction <maximumf>, %6, %cst_4 [1] : vector<2x16x128xf32> to vector<2x128xf32>
    %8 = vector.shape_cast %7 : vector<2x128xf32> to vector<2x1x128xf32>
    %9 = vector.broadcast %8 : vector<2x1x128xf32> to vector<2x16x128xf32>
    %10 = arith.subf %6, %9 : vector<2x16x128xf32>
    %11 = math.exp %10 : vector<2x16x128xf32>
    %c0_5 = arith.constant 0 : index
    %c0_6 = arith.constant 0 : index
    %12 = vector.load %arg6[%c0_5, %c0_6] : memref<128x128xbf16, #tpu.memory_space<vmem>>, vector<128x128xbf16>
    %cst_7 = arith.constant dense<0.000000e+00> : vector<32x128xf32>
    %13 = tpu.matmul %3, %12, %cst_7 {dimension_numbers = #tpu.dot_dimension_numbers<[1], [0], [0], [1], [0, 0, 1, 1], [], []>} : vector<32x128xbf16>, vector<128x128xbf16>, vector<32x128xf32> -> vector<32x128xf32>
    %14 = vector.shape_cast %13 : vector<32x128xf32> to vector<2x16x128xf32>
    %15 = arith.mulf %11, %14 : vector<2x16x128xf32>
    %cst_8 = arith.constant dense<0.000000e+00> : vector<2x128xf32>
    %16 = vector.multi_reduction <add>, %15, %cst_8 [1] : vector<2x16x128xf32> to vector<2x128xf32>
    %cst_9 = arith.constant dense<0.000000e+00> : vector<2x128xf32>
    %17 = vector.multi_reduction <add>, %11, %cst_9 [1] : vector<2x16x128xf32> to vector<2x128xf32>
    %18 = tpu.reciprocal %17 {approx = true} : vector<2x128xf32> -> vector<2x128xf32>
    %19 = arith.mulf %16, %18 : vector<2x128xf32>
    %c0_10 = arith.constant 0 : index
    %c0_11 = arith.constant 0 : index
    %20 = vector.load %arg7[%c0_10, %c0_11] : memref<1x128xf32, #tpu.memory_space<vmem>>, vector<1x128xf32>
    %21 = vector.broadcast %20 : vector<1x128xf32> to vector<2x128xf32>
    %22 = arith.addf %19, %21 : vector<2x128xf32>
    %c0_12 = arith.constant 0 : index
    %c0_13 = arith.constant 0 : index
    %23 = vector.load %arg8[%c0_12, %c0_13] : memref<2x128xf32, #tpu.memory_space<vmem>>, vector<2x128xf32>
    tpu.vector_store %arg8[%c0_12, %c0_13], %22 {strides = array<i32>} : memref<2x128xf32, #tpu.memory_space<vmem>>, vector<2x128xf32>,
    return
  }
  func.func @transform_0(%arg0: i32, %arg1: i32) -> (i32, i32, i32) {
    %c0_i32 = arith.constant 0 : i32
    %c0_i32_0 = arith.constant 0 : i32
    %c0_i32_1 = arith.constant 0 : i32
    return %arg0, %c0_i32, %c0_i32_0 : i32, i32, i32
  }
  func.func @transform_1(%arg0: i32, %arg1: i32) -> (i32, i32) {
    %c0_i32 = arith.constant 0 : i32
    %c0_i32_0 = arith.constant 0 : i32
    %c0_i32_1 = arith.constant 0 : i32
    return %c0_i32, %c0_i32_0 : i32, i32
  }
  func.func @transform_2(%arg0: i32, %arg1: i32) -> (i32, i32) {
    %c0_i32 = arith.constant 0 : i32
    %c0_i32_0 = arith.constant 0 : i32
    %c0_i32_1 = arith.constant 0 : i32
    return %c0_i32, %c0_i32_0 : i32, i32
  }
  func.func @transform_3(%arg0: i32, %arg1: i32) -> (i32, i32) {
    %c0_i32 = arith.constant 0 : i32
    %c0_i32_0 = arith.constant 0 : i32
    return %c0_i32, %arg1 : i32, i32
  }
  func.func @transform_4(%arg0: i32, %arg1: i32) -> (i32, i32) {
    %c0_i32 = arith.constant 0 : i32
    %c0_i32_0 = arith.constant 0 : i32
    return %c0_i32, %arg1 : i32, i32
  }
  func.func @transform_5(%arg0: i32, %arg1: i32) -> (i32, i32) {
    %c0_i32 = arith.constant 0 : i32
    %c0_i32_0 = arith.constant 0 : i32
    return %c0_i32, %arg1 : i32, i32
  }
  func.func @transform_6(%arg0: i32, %arg1: i32) -> (i32, i32) {
    %c0_i32 = arith.constant 0 : i32
    return %arg0, %arg1 : i32, i32
  }
}

</mosaic_0001>

<bundles_post_ra>
// kernel: tpu_custom_call.1
= control target key start
LH: loop header
LB: loop body
LE: loop exit
PB: predicated region body
PF: predicated region fallthrough
CT: control target
= control target key end

     0   :  { %11 = vsyncpa [#allocation4], 0  ;;  %s958_s0 = inlined_call_operand.hbm [shape: bf16[2,16,128], index: 0, kind: input, shape index: {}]   ;;  %s959_s1 = inlined_call_operand.hbm [shape: bf16[128,128], index: 1, kind: input, shape index: {}]   ;;  %s960_s2 = inlined_call_operand.vmem [shape: f32[1,128], index: 2, kind: input, shape index: {}]   ;;  %s961_s3 = inlined_call_operand.hbm [shape: bf16[128,128], index: 3, kind: input, shape index: {}]   ;;  %s962_s4 = inlined_call_operand.hbm [shape: bf16[128,128], index: 4, kind: input, shape index: {}]   ;;  %s963_s5 = inlined_call_operand.vmem [shape: f32[1,128], index: 5, kind: input, shape index: {}]   ;;  %s964_s6 = inlined_call_operand.hbm [shape: f32[2,128], index: 6, kind: output, shape index: {}]  }
   0x1   :  { %12 = vsyncpa [#allocation7], 0 }
   0x2   :  { %13 = vsyncpa [#allocation10], 0 }
   0x3   :  { %14 = vsyncpa [#allocation5], 0  ;;  %s883_s21 = smov [#allocation6]   ;;  %s884_s23 = smov [#allocation3]  }
   0x4   :  { %s32_s22 = sshll.u32 %s883_s21, 4  ;;  %s20_s24 = sshll.u32 %s884_s23, 4  ;;  %s33_s22 = int_to_ptr.vmem [resolvable:$true] %s32_s22  ;;  %s21_s24 = int_to_ptr.vmem [resolvable:$true] %s20_s24 }
   0x5   :  { %s783_s25 = scalar_lea.vmem %s33_s22, 1024  ;;  %p788_p1 = scmp.lt.s32.totalorder %s33_s22, %s33_s22 }
   0x6   :  { %p784_p0 = scmp.ne.s32.totalorder %s33_s22, %s783_s25  ;;  %p789_p2 = scmp.lt.s32.totalorder %s783_s25, %s783_s25 }
   0x8   :  { %p790_p3 = por %p789_p2, %p788_p1 }
   0xa   :  { %p791_p4 = pnand %p790_p3, %p784_p0 }
   0xc   :  { %794 = shalt.err (!%p791_p4)
}
   0xd   :  { %s885_s26 = smov 64   ;;  %s886_s27 = smov 4  }
   0xe   :  { %38 = dma.hbm_to_vmem [thread:$0]  %s959_s1, 1024, %s33_s22, [#allocation7], %s885_s26, %s885_s26, %s886_s27  }
   0xf   :  { %s803_s30 = scalar_lea.vmem %s21_s24, 256  ;;  %p808_p6 = scmp.lt.s32.totalorder %s21_s24, %s21_s24 }
  0x10   :  { %p804_p5 = scmp.ne.s32.totalorder %s21_s24, %s803_s30  ;;  %p809_p7 = scmp.lt.s32.totalorder %s803_s30, %s803_s30 }
  0x12   :  { %p810_p8 = por %p809_p7, %p808_p6 }
  0x14   :  { %p811_p9 = pnand %p810_p8, %p804_p5 }
  0x16   :  { %814 = shalt.err (!%p811_p9)
}
  0x17   :  { %26 = dma.hbm_to_vmem [thread:$0]  %s958_s0, 256, %s21_s24, [#allocation4], %s885_s26, %s885_s26, %s886_s27  }
  0x18   :  { %s887_s9 = smov [#allocation8]   ;;  %s888_s11 = smov [#allocation9]  }
  0x19   :  { %s46_s10 = sshll.u32 %s887_s9, 4  ;;  %s58_s12 = sshll.u32 %s888_s11, 4  ;;  %s47_s10 = int_to_ptr.vmem [resolvable:$true] %s46_s10  ;;  %s59_s12 = int_to_ptr.vmem [resolvable:$true] %s58_s12 }
  0x1a   :  { %s823_s1 = scalar_lea.vmem %s47_s10, 1024  ;;  %p828_p11 = scmp.lt.s32.totalorder %s47_s10, %s47_s10 }
  0x1b   :  { %p824_p10 = scmp.ne.s32.totalorder %s47_s10, %s823_s1  ;;  %p829_p12 = scmp.lt.s32.totalorder %s823_s1, %s823_s1 }
  0x1d   :  { %p830_p13 = por %p829_p12, %p828_p11 }
  0x1f   :  { %p831_p0 = pnand %p830_p13, %p824_p10 }
  0x21   :  { %834 = shalt.err (!%p831_p0)
}
  0x22   :  { %52 = dma.hbm_to_vmem [thread:$0]  %s961_s3, 1024, %s47_s10, [#allocation7], %s885_s26, %s885_s26, %s886_s27  }
  0x23   :  { %s843_s0 = scalar_lea.vmem %s59_s12, 1024  ;;  %p848_p2 = scmp.lt.s32.totalorder %s59_s12, %s59_s12 }
  0x24   :  { %p844_p1 = scmp.ne.s32.totalorder %s59_s12, %s843_s0  ;;  %p849_p3 = scmp.lt.s32.totalorder %s843_s0, %s843_s0 }
  0x26   :  { %p850_p4 = por %p849_p3, %p848_p2 }
  0x28   :  { %p851_p5 = pnand %p850_p4, %p844_p1 }
  0x2a   :  { %854 = shalt.err (!%p851_p5)
}
  0x2b   :  { %64 = dma.hbm_to_vmem [thread:$0]  %s962_s4, 1024, %s59_s12, [#allocation10], %s885_s26, %s885_s26, %s886_s27  }
  0x2c   :  { %875 = dma.done.wait [#allocation4], 256  }
  0x2d   :  { %876 = vsyncadd [#allocation4], 4294967040 }
  0x2e   :  { %877 = dma.done.wait [#allocation7], 2048  }
  0x2f   :  { %878 = vsyncadd [#allocation7], 4294965248 }
  0x30   :  { %879 = dma.done.wait [#allocation10], 1024  }
  0x31   :  { %880 = vsyncadd [#allocation10], 4294966272  ;;  %v727_v0 = vld [vmem:[#allocation6 + $0x38] sm:$0xff]   ;;  %v728_v1 = vld [vmem:[#allocation6 + $0x30] sm:$0xff]   ;;  %s889_s18 = smov [#allocation11]   ;;  %vm560_vm0 = vcmask 1041409  }
  0x32   :  { %660 = vmatprep.subr.bf16.mxu0 %v727_v0  ;;  %v729_v2 = vld [vmem:[#allocation6 + $0x28] sm:$0xff]   ;;  %v730_v3 = vld [vmem:[#allocation6 + $0x20] sm:$0xff]   ;;  %v735_v4 = vld [vmem:[#allocation3] sm:$0xff]   ;;  %s570_s19 = sshll.u32 %s889_s18, 4  ;;  %s571_s19 = int_to_ptr.vmem [resolvable:$true] %s570_s19 }
  0x33   :  { %661 = vmatpush3.bf16.msra.mxu0 %v727_v0  ;;  %v731_v5 = vld [vmem:[#allocation6 + $0x18] sm:$0xff]   ;;  %676 = vmatprep.mubr.bf16.mxu0 %v735_v4  ;;  %v732_v6 = vld [vmem:[#allocation6 + $0x10] sm:$0xff]   ;;  %v733_v7 = vld [vmem:[#allocation6 + $0x8] sm:$0xff]   ;;  %s855_s20 = scalar_lea.vmem %s571_s19, 32  ;;  %p860_p7 = scmp.lt.s32.totalorder %s571_s19, %s571_s19 }
  0x34   :  { %662 = vmatprep.subr.bf16.mxu0 %v728_v1  ;;  %v734_v8 = vld [vmem:[#allocation6] sm:$0xff]   ;;  %v736_v9 = vld [vmem:[#allocation3 + $0x8] sm:$0xff]   ;;  %v739_v12 = vld [vmem:[#allocation8 + $0x30] sm:$0xff]   ;;  %p856_p6 = scmp.ne.s32.totalorder %s571_s19, %s855_s20  ;;  %p861_p8 = scmp.lt.s32.totalorder %s855_s20, %s855_s20 }
  0x35   :  { %v737_v10 = vld [vmem:[#allocation8 + $0x38] sm:$0xff]   ;;  %v740_v13 = vld [vmem:[#allocation9 + $0x30] sm:$0xff]   ;;  %v741_v14 = vld [vmem:[#allocation8 + $0x28] sm:$0xff]  }
  0x36   :  { %v738_v11 = vld [vmem:[#allocation9 + $0x38] sm:$0xff]   ;;  %680 = vmatprep.subr.bf16.mxu1 %v737_v10  ;;  %v742_v15 = vld [vmem:[#allocation9 + $0x28] sm:$0xff]   ;;  %v743_v16 = vld [vmem:[#allocation8 + $0x20] sm:$0xff]   ;;  %p862_p9 = por %p861_p8, %p860_p7 }
  0x37   :  { %663 = vmatpush3.bf16.msra.mxu0 %v728_v1  ;;  %681 = vmatpush3.bf16.msra.mxu1 %v737_v10  ;;  %v744_v17 = vld [vmem:[#allocation9 + $0x20] sm:$0xff]   ;;  %v745_v18 = vld [vmem:[#allocation8 + $0x18] sm:$0xff]   ;;  %v747_v20 = vld [vmem:[#allocation8 + $0x10] sm:$0xff]  }
  0x38   :  { %664 = vmatprep.subr.bf16.mxu0 %v729_v2  ;;  %682 = vmatprep.subr.bf16.mxu1 %v739_v12  ;;  %v746_v19 = vld [vmem:[#allocation9 + $0x18] sm:$0xff]   ;;  %v748_v21 = vld [vmem:[#allocation9 + $0x10] sm:$0xff]   ;;  %v749_v22 = vld [vmem:[#allocation8 + $0x8] sm:$0xff]   ;;  %p863_p10 = pnand %p862_p9, %p856_p6 }
  0x39   :  { %v750_v23 = vld [vmem:[#allocation9 + $0x8] sm:$0xff]   ;;  %v751_v24 = vld [vmem:[#allocation8] sm:$0xff]  }
  0x3a   :  { %v752_v25 = vld [vmem:[#allocation9] sm:$0xff]  }
  0x3b   :  { %665 = vmatpush3.bf16.msra.mxu0 %v729_v2  ;;  %683 = vmatpush3.bf16.msra.mxu1 %v739_v12  ;;  %v581_v26 = vld [vmem:[%s960_s2] ss:$0 sm:$0xff] }
  0x3c   :  { %666 = vmatprep.subr.bf16.mxu0 %v730_v3  ;;  %684 = vmatprep.subr.bf16.mxu1 %v741_v14 }
  0x3f   :  { %667 = vmatpush3.bf16.msra.mxu0 %v730_v3  ;;  %685 = vmatpush3.bf16.msra.mxu1 %v741_v14 }
  0x40   :  { %668 = vmatprep.subr.bf16.mxu0 %v731_v5  ;;  %686 = vmatprep.subr.bf16.mxu1 %v743_v16 }
  0x43   :  { %669 = vmatpush3.bf16.msra.mxu0 %v731_v5  ;;  %687 = vmatpush3.bf16.msra.mxu1 %v743_v16 }
  0x44   :  { %670 = vmatprep.subr.bf16.mxu0 %v732_v6  ;;  %688 = vmatprep.subr.bf16.mxu1 %v745_v18 }
  0x47   :  { %671 = vmatpush3.bf16.msra.mxu0 %v732_v6  ;;  %689 = vmatpush3.bf16.msra.mxu1 %v745_v18 }
  0x48   :  { %672 = vmatprep.subr.bf16.mxu0 %v733_v7  ;;  %690 = vmatprep.subr.bf16.mxu1 %v747_v20 }
  0x4b   :  { %673 = vmatpush3.bf16.msra.mxu0 %v733_v7  ;;  %691 = vmatpush3.bf16.msra.mxu1 %v747_v20 }
  0x4c   :  { %674 = vmatprep.subr.bf16.mxu0 %v734_v8  ;;  %692 = vmatprep.subr.bf16.mxu1 %v749_v22 }
  0x4f   :  { %675 = vmatpush3.bf16.msra.mxu0 %v734_v8  ;;  %693 = vmatpush3.bf16.msra.mxu1 %v749_v22 }
  0x50   :  { %700 = vmatprep.subr.bf16.mxu0 %v738_v11  ;;  %694 = vmatprep.subr.bf16.mxu1 %v751_v24 }
  0x52   :  { %677 = vmatmul.mubr.bf16.vlgmr.msra.gmra.mxu0 %v736_v9 }
  0x53   :  { %701 = vmatpush3.bf16.msra.mxu0 %v738_v11  ;;  %695 = vmatpush3.bf16.msra.mxu1 %v751_v24 }
  0x54   :  { %702 = vmatprep.subr.bf16.mxu0 %v740_v13 }
  0x57   :  { %703 = vmatpush3.bf16.msra.mxu0 %v740_v13 }
  0x58   :  { %704 = vmatprep.subr.bf16.mxu0 %v742_v15 }
  0x5b   :  { %705 = vmatpush3.bf16.msra.mxu0 %v742_v15 }
  0x5c   :  { %706 = vmatprep.subr.bf16.mxu0 %v744_v17 }
  0x5f   :  { %707 = vmatpush3.bf16.msra.mxu0 %v744_v17 }
  0x60   :  { %708 = vmatprep.subr.bf16.mxu0 %v746_v19 }
  0x63   :  { %709 = vmatpush3.bf16.msra.mxu0 %v746_v19 }
  0x64   :  { %710 = vmatprep.subr.bf16.mxu0 %v748_v21 }
  0x67   :  { %711 = vmatpush3.bf16.msra.mxu0 %v748_v21 }
  0x68   :  { %712 = vmatprep.subr.bf16.mxu0 %v750_v23 }
  0x6b   :  { %713 = vmatpush3.bf16.msra.mxu0 %v750_v23 }
  0x6c   :  { %714 = vmatprep.subr.bf16.mxu0 %v752_v25 }
  0x6f   :  { %715 = vmatpush3.bf16.msra.mxu0 %v752_v25 }
 0x112   :  { %v678_v27 = vpop.f32.mrf.mxu0 }
 0x113   :  { %v214_v28 = vadd.f32 %v678_v27, %v581_v26 }
 0x114   :  { %v205_v29 = vpop.f32.mrf.mxu0 }
 0x115   :  { %v206_v30 = vadd.f32 %v581_v26, %v205_v29  ;;  %755 = vtanh.f32 %v214_v28 }
 0x116   :  { %v679_v31 = vpop.f32.mrf.mxu0 }
 0x117   :  { %v217_v32 = vadd.f32 %v679_v31, %v581_v26 }
 0x118   :  { %v208_v33 = vpop.f32.mrf.mxu0 }
 0x119   :  { %757 = vtanh.f32 %v217_v32  ;;  %v209_v34 = vadd.f32 %v581_v26, %v208_v33 }
 0x11a   :  { %759 = vtanh.f32 %v206_v30 }
 0x11b   :  { %761 = vtanh.f32 %v209_v34 }
 0x122   :  { %v756_v35 = vpop.eup %755 }
 0x126   :  { %v758_v36 = vpop.eup %757 }
 0x127   :  { %v760_v37 = vpop.eup %759  ;;  %v627_v38 = vpack.c.bf16 %v758_v36, %v756_v35 }
 0x128   :  { %v762_v39 = vpop.eup %761 }
 0x129   :  { %629 = vst [vmem:[#allocation2 + $0x8] sm:$0xff] %v627_v38   ;;  %v622_v40 = vpack.c.bf16 %v762_v39, %v760_v37 }
 0x12b   :  { %623 = vst [vmem:[#allocation2] sm:$0xff] %v622_v40  }
 0x130   :  { %v754_v42 = vld [vmem:[#allocation2 + $0x8] sm:$0xff]  }
 0x132   :  { %v753_v41 = vld [vmem:[#allocation2] sm:$0xff]  }
 0x133   :  { %696 = vmatprep.mubr.bf16.mxu1 %v753_v41  ;;  %716 = vmatprep.mubr.bf16.mxu0 %v753_v41 }
 0x134   :  { %697 = vmatmul.mubr.bf16.vlgmr.msra.gmra.mxu1 %v754_v42  ;;  %717 = vmatmul.mubr.bf16.vlgmr.msra.gmra.mxu0 %v754_v42 }
 0x1f4   :  { %v698_v43 = vpop.f32.mrf.mxu1  ;;  %v718_v5 = vpop.f32.mrf.mxu0 }
 0x1f6   :  { %v358_v44 = vpop.f32.mrf.mxu1  ;;  %v497_v6 = vpop.f32.mrf.mxu0 }
 0x1f8   :  { %v699_v45 = vpop.f32.mrf.mxu1  ;;  %v719_v7 = vpop.f32.mrf.mxu0 }
 0x1f9   :  { %v380_v46 = vmax.f32 %v698_v43, %v699_v45 }
 0x1fa   :  { %v361_v47 = vpop.f32.mrf.mxu1  ;;  %v500_v15 = vpop.f32.mrf.mxu0 }
 0x1fb   :  { %v381_v48 = vrot.slane %v380_v46, 4  ;;  %v373_v49 = vmax.f32 %v358_v44, %v361_v47 }
 0x1fd   :  { %v382_v50 = vmax.f32 %v380_v46, %v381_v48  ;;  %v374_v51 = vrot.slane %v373_v49, 4 }
 0x1ff   :  { %v383_v52 = vrot.slane %v382_v50, 2  ;;  %v375_v53 = vmax.f32 %v373_v49, %v374_v51 }
 0x201   :  { %v384_v54 = vmax.f32 %v382_v50, %v383_v52  ;;  %v376_v55 = vrot.slane %v375_v53, 2 }
 0x203   :  { %v385_v56 = vrot.slane %v384_v54, 1  ;;  %v377_v57 = vmax.f32 %v375_v53, %v376_v55 }
 0x205   :  { %v386_v58 = vmax.f32 %v384_v54, %v385_v56  ;;  %v378_v59 = vrot.slane %v377_v57, 1 }
 0x207   :  { %v389_v60 = vsub.f32 %v698_v43, %v386_v58  ;;  %v390_v61 = vsub.f32 %v699_v45, %v386_v58  ;;  %v379_v62 = vmax.f32 %v377_v57, %v378_v59  ;;  %v614_v45 = vld [vmem:[%s963_s5] ss:$0 sm:$0xff] }
 0x209   :  { %v395_v63 = vmul.f32 1.442695, %v389_v60  ;;  %v397_v0 = vmul.f32 1.442695, %v390_v61  ;;  %v387_v1 = vsub.f32 %v358_v44, %v379_v62  ;;  %v388_v2 = vsub.f32 %v361_v47, %v379_v62 }
 0x20b   :  { %763 = vpow2.f32 %v395_v63  ;;  %v391_v3 = vmul.f32 1.442695, %v387_v1  ;;  %v393_v4 = vmul.f32 1.442695, %v388_v2 }
 0x20c   :  { %765 = vpow2.f32 %v397_v0 }
 0x20d   :  { %767 = vpow2.f32 %v391_v3 }
 0x20e   :  { %769 = vpow2.f32 %v393_v4 }
 0x218   :  { %v764_v8 = vpop.eup %763 }
 0x219   :  { %v766_v9 = vpop.eup %765  ;;  %v514_v10 = vmul.f32 %v764_v8, %v718_v5 }
 0x21a   :  { %v768_v11 = vpop.eup %767  ;;  %v537_v12 = vadd.f32 %v766_v9, %v764_v8  ;;  %v515_v13 = vmul.f32 %v766_v9, %v719_v7 }
 0x21b   :  { %v770_v14 = vpop.eup %769  ;;  %v512_v16 = vmul.f32 %v768_v11, %v497_v6 }
 0x21c   :  { %v538_v17 = vrot.slane %v537_v12, 4  ;;  %v523_v18 = vadd.f32 %v515_v13, %v514_v10  ;;  %v530_v19 = vadd.f32 %v770_v14, %v768_v11  ;;  %v513_v20 = vmul.f32 %v770_v14, %v500_v15 }
 0x21e   :  { %v539_v21 = vadd.f32 %v538_v17, %v537_v12  ;;  %v531_v22 = vrot.slane %v530_v19, 4  ;;  %v516_v23 = vadd.f32 %v513_v20, %v512_v16  ;;  %v524_v25 = vrot.slane %v523_v18, 4 }
 0x220   :  { %v540_v24 = vrot.slane %v539_v21, 2  ;;  %v532_v26 = vadd.f32 %v531_v22, %v530_v19  ;;  %v517_v29 = vrot.slane %v516_v23, 4  ;;  %v525_v31 = vadd.f32 %v524_v25, %v523_v18 }
 0x222   :  { %v541_v27 = vadd.f32 %v540_v24, %v539_v21  ;;  %v533_v28 = vrot.slane %v532_v26, 2  ;;  %v518_v35 = vadd.f32 %v517_v29, %v516_v23  ;;  %v526_v36 = vrot.slane %v525_v31, 2 }
 0x224   :  { %v542_v30 = vrot.slane %v541_v27, 1  ;;  %v534_v32 = vadd.f32 %v533_v28, %v532_v26  ;;  %v519_v38 = vrot.slane %v518_v35, 2  ;;  %v527_v39 = vadd.f32 %v526_v36, %v525_v31 }
 0x226   :  { %v543_v33 = vadd.f32 %v542_v30, %v541_v27  ;;  %v535_v34 = vrot.slane %v534_v32, 1  ;;  %v520_v40 = vadd.f32 %v519_v38, %v518_v35  ;;  %v528_v41 = vrot.slane %v527_v39, 1 }
 0x228   :  { %771 = vrcp.f32 %v543_v33  ;;  %v536_v37 = vadd.f32 %v535_v34, %v534_v32  ;;  %v521_v42 = vrot.slane %v520_v40, 1  ;;  %v529_v43 = vadd.f32 %v528_v41, %v527_v39 }
 0x22a   :  { %773 = vrcp.f32 %v536_v37  ;;  %v522_v46 = vadd.f32 %v521_v42, %v520_v40 }
 0x235   :  { %v772_v44 = vpop.eup %771 }
 0x236   :  { %v547_v47 = vmul.f32 %v772_v44, %v529_v43 }
 0x237   :  { %v774_v48 = vpop.eup %773 }
 0x238   :  { %v546_v49 = vmul.f32 %v774_v48, %v522_v46  ;;  %v556_v50 = vadd.f32 %v614_v45, %v547_v47 }
 0x23a   :  { %v555_v51 = vadd.f32 %v614_v45, %v546_v49  ;;  %v559_v52 = vrot.slane %v556_v50, 7 }
 0x23c   :  { %v561_v53 = vsel %vm560_vm0, %v559_v52, %v555_v51 }
 0x23d   :  { %563 = vst [vmem:[#allocation11] sm:$0x3] %v561_v53 }
 0x23e   :  { %866 = shalt.err (!%p863_p10)
}
 0x23f   :  { %573 = dma.vmem_to_hbm [thread:$0]  %s571_s19, 32, %s964_s6, [#allocation5]  }
 0x240   :  { %881 = dma.done.wait [#allocation5], 32  }
 0x241   :  { %882 = vsyncadd [#allocation5], 4294967264 }
 0x242   :  { %577 = vsyncpa [#allocation4], 1 }
 0x243   :  { %578 = vsyncpa [#allocation7], 1 }
 0x244   :  { %579 = vsyncpa [#allocation10], 1 }
 0x245   :  { %580 = vsyncpa [#allocation5], 1 }

</bundles_post_ra>
